<compile_context>
chip_gen: v5e
topology: v5e:2x2
jax: 0.10.0
libtpu: 0.0.40
codegen_flags: <defaults>
</compile_context>

<pallas_src>
import jax
import jax.numpy as jnp
from jax.experimental import pallas as pl
from jax.experimental.pallas import tpu as pltpu

EPS = 1e-5
NEG_SLOPE = 0.2


def _leaky(v):
    return jnp.where(v >= 0, v, NEG_SLOPE * v)


def _stats_kernel(x_ref, w1_ref, sum_ref, qss_ref, msq_ref):
    """Accumulate per-channel sum / centered-ssq / squared-tile-means of W1@x."""
    n = pl.program_id(0)
    t = pl.program_id(1)

    @pl.when(jnp.logical_and(n == 0, t == 0))
    def _():
        sum_ref[...] = jnp.zeros_like(sum_ref)
        qss_ref[...] = jnp.zeros_like(qss_ref)
        msq_ref[...] = jnp.zeros_like(msq_ref)

    x = x_ref[0].astype(jnp.float32)                                   # (C, TP)
    dx0 = jnp.dot(w1_ref[...], x, preferred_element_type=jnp.float32)  # (C, TP)
    tp = jnp.float32(dx0.shape[1])
    tsum = jnp.sum(dx0, axis=1, keepdims=True)                         # (C, 1)
    tmean = tsum / tp
    cent = dx0 - tmean                                                 # per-tile shift
    sum_ref[...] += tsum
    qss_ref[...] += jnp.sum(cent * cent, axis=1, keepdims=True)
    msq_ref[...] += tmean * tmean


def _apply_kernel(g_ref, x_ref, wg_ref, bg_ref, w1p_ref, b1p_ref, o_ref):
    """Fused: SE gate from guide, BN-folded 1x1 conv on x, multiply, LeakyReLU."""
    g = g_ref[0].astype(jnp.float32)                                   # (C, TP)
    x = x_ref[0].astype(jnp.float32)                                   # (C, TP)

    # gen_se_weights1: conv1x1 -> LeakyReLU(0.2) -> Sigmoid
    s = jnp.dot(wg_ref[...], g, preferred_element_type=jnp.float32) + bg_ref[...]
    s = jax.nn.sigmoid(_leaky(s))

    # conv_1 with BatchNorm folded into (w1p, b1p) on the host.
    d = jnp.dot(w1p_ref[...], x, preferred_element_type=jnp.float32) + b1p_ref[...]

    o_ref[0] = _leaky(d * s).astype(o_ref.dtype)


def _choose_tile_pixels(P, target=4096):
    """Largest multiple-of-128 divisor of P that is <= target (or full P)."""
    if P % 128 != 0:
        return P
    chunks = P // 128
    best = 1
    for k in range(1, chunks + 1):
        if chunks % k == 0 and k * 128 <= target:
            best = k
    return best * 128


def attention_fru(guide, x, wg, bg, w1, b1, *, max_tile_pixels=4096):
    """guide, x: (N, C, H, W).  wg, w1: (C_out, C_in).  bg, b1: (C,)."""
    N, C, H, W = x.shape
    P = H * W
    TP = _choose_tile_pixels(P, max_tile_pixels)
    n_t = P // TP

    # NCHW -> (N, C, P): a free reshape, pixels land on the lane axis.
    x3 = x.reshape(N, C, P)
    g3 = guide.reshape(N, C, P)

    w1f = w1.astype(jnp.float32)
    wgf = wg.astype(jnp.float32)
    bgf = bg.reshape(C, 1).astype(jnp.float32)

    row_spec = pl.BlockSpec((1, C, TP), lambda n, t: (n, 0, t))
    w_spec = pl.BlockSpec((C, C), lambda n, t: (0, 0))
    b_spec = pl.BlockSpec((C, 1), lambda n, t: (0, 0))
    stat_spec = pl.BlockSpec((C, 1), lambda n, t: (0, 0))

    # ---- Pass 1: per-channel batch statistics of dx0 = W1 @ x (bias cancels under BN).
    ssum, qss, msq = pl.pallas_call(
        _stats_kernel,
        out_shape=(jax.ShapeDtypeStruct((C, 1), jnp.float32),
                   jax.ShapeDtypeStruct((C, 1), jnp.float32),
                   jax.ShapeDtypeStruct((C, 1), jnp.float32)),
        grid_spec=pltpu.PrefetchScalarGridSpec(
            num_scalar_prefetch=0,
            grid=(N, n_t),
            in_specs=[row_spec, w_spec],
            out_specs=(stat_spec, stat_spec, stat_spec),
        ),
        compiler_params=pltpu.CompilerParams(
            dimension_semantics=("arbitrary", "arbitrary")),
    )(x3, w1f)

    total = jnp.float32(N * P)
    mean0 = ssum[:, 0] / total                                     # mean of W1 @ x
    var = (qss[:, 0] + jnp.float32(TP) * msq[:, 0]) / total - mean0 * mean0
    var = jnp.maximum(var, 0.0)                                    # guard fp round-off
    inv_std = jax.lax.rsqrt(var + EPS)

    # Fold BN into the 1x1 conv: normed(dx) = (inv_std*W1) @ x + (-inv_std*mean0).
    w1p = w1f * inv_std[:, None]
    b1p = (-mean0 * inv_std).reshape(C, 1)

    # ---- Pass 2: fused SE-gate + normalized conv + LeakyReLU (fully parallel grid).
    out3 = pl.pallas_call(
        _apply_kernel,
        out_shape=jax.ShapeDtypeStruct((N, C, P), x.dtype),
        grid_spec=pltpu.PrefetchScalarGridSpec(
            num_scalar_prefetch=0,
            grid=(N, n_t),
            in_specs=[row_spec, row_spec, w_spec, b_spec, w_spec, b_spec],
            out_specs=row_spec,
        ),
        compiler_params=pltpu.CompilerParams(
            dimension_semantics=("parallel", "parallel")),
    )(g3, x3, wgf, bgf, w1p, b1p)

    return out3.reshape(N, C, H, W)


def attention_fru_ref(guide, x, wg, bg, w1, b1):
    """Pure-JAX reference (mirrors the PyTorch forward, training-mode BN)."""
    def conv1x1(inp, w, b):
        return jnp.einsum('nchw,oc->nohw', inp, w) + b[None, :, None, None]

    s = conv1x1(guide, wg, bg)
    s = jnp.where(s >= 0, s, NEG_SLOPE * s)
    s = jax.nn.sigmoid(s)
    dx = conv1x1(x, w1, b1)
    mean = dx.mean(axis=(0, 2, 3), keepdims=True)
    var = dx.var(axis=(0, 2, 3), keepdims=True)   # biased, like BN training mode
    dx = (dx - mean) / jnp.sqrt(var + EPS)
    y = dx * s
    return jnp.where(y >= 0, y, NEG_SLOPE * y)


if __name__ == "__main__":
    key = jax.random.PRNGKey(0)
    kg, kx, k1, k2, k3, k4 = jax.random.split(key, 6)

    N, C, H, W = 2, 8, 16, 16
    guide = jax.random.normal(kg, (N, C, H, W), dtype=jnp.float32)
    x = jax.random.normal(kx, (N, C, H, W), dtype=jnp.float32)

    # Deterministic synthetic parameters (Conv2d 1x1 weights reshaped to (C_out, C_in)).
    wg = 0.3 * jax.random.normal(k1, (C, C), dtype=jnp.float32)
    bg = 0.1 * jax.random.normal(k2, (C,), dtype=jnp.float32)
    w1 = 0.3 * jax.random.normal(k3, (C, C), dtype=jnp.float32)
    b1 = 0.1 * jax.random.normal(k4, (C,), dtype=jnp.float32)

    out = attention_fru(guide, x, wg, bg, w1, b1)
    out = jax.block_until_ready(out)

    ref = attention_fru_ref(guide, x, wg, bg, w1, b1)
    assert out.shape == (N, C, H, W)
    assert jnp.allclose(out, ref, atol=2e-4, rtol=2e-3), \
        f"max abs diff {jnp.max(jnp.abs(out - ref))}"

    print("KERNEL_OK")
</pallas_src>

<mosaic_0001>
module attributes {stable_mosaic.version = 11 : i64} {
  func.func @_stats_kernel(%arg0: i32, %arg1: i32, %arg2: memref<1x8x256xf32, #tpu.memory_space<vmem>>, %arg3: memref<8x8xf32, #tpu.memory_space<vmem>>, %arg4: memref<8x1xf32, #tpu.memory_space<vmem>>, %arg5: memref<8x1xf32, #tpu.memory_space<vmem>>, %arg6: memref<8x1xf32, #tpu.memory_space<vmem>>) attributes {dimension_semantics = [#tpu.dimension_semantics<arbitrary>, #tpu.dimension_semantics<arbitrary>], iteration_bounds = array<i64: 2, 1>, scalar_prefetch = 0 : i64, scratch_operands = 0 : i64, tpu.core_type = #tpu.core_type<tc>, window_params = [{transform_indices = @transform_0, window_bounds = array<i64: 1, 8, 256>}, {pipeline_mode = #tpu.pipeline_mode<synchronous>, transform_indices = @transform_1, window_bounds = array<i64: 8, 8>}, {pipeline_mode = #tpu.pipeline_mode<synchronous>, transform_indices = @transform_2, window_bounds = array<i64: 8, 1>}, {pipeline_mode = #tpu.pipeline_mode<synchronous>, transform_indices = @transform_3, window_bounds = array<i64: 8, 1>}, {pipeline_mode = #tpu.pipeline_mode<synchronous>, transform_indices = @transform_4, window_bounds = array<i64: 8, 1>}]} {
    %c0_i32 = arith.constant 0 : i32
    %0 = arith.cmpi eq, %arg0, %c0_i32 : i32
    %c0_i32_0 = arith.constant 0 : i32
    %1 = arith.cmpi eq, %arg1, %c0_i32_0 : i32
    %2 = arith.andi %0, %1 : i1
    %3 = arith.extui %2 : i1 to i32
    %c0_i32_1 = arith.constant 0 : i32
    %4 = arith.cmpi ne, %3, %c0_i32_1 : i32
    scf.if %4 {
      %cst_21 = arith.constant 0.000000e+00 : f32
      %28 = vector.broadcast %cst_21 : f32 to vector<8x1xf32>
      %c0_22 = arith.constant 0 : index
      %c0_23 = arith.constant 0 : index
      %29 = vector.load %arg4[%c0_22, %c0_23] : memref<8x1xf32, #tpu.memory_space<vmem>>, vector<8x1xf32>
      tpu.vector_store %arg4[%c0_22, %c0_23], %28 {strides = array<i32>} : memref<8x1xf32, #tpu.memory_space<vmem>>, vector<8x1xf32>,
      %cst_24 = arith.constant 0.000000e+00 : f32
      %30 = vector.broadcast %cst_24 : f32 to vector<8x1xf32>
      %c0_25 = arith.constant 0 : index
      %c0_26 = arith.constant 0 : index
      %31 = vector.load %arg5[%c0_25, %c0_26] : memref<8x1xf32, #tpu.memory_space<vmem>>, vector<8x1xf32>
      tpu.vector_store %arg5[%c0_25, %c0_26], %30 {strides = array<i32>} : memref<8x1xf32, #tpu.memory_space<vmem>>, vector<8x1xf32>,
      %cst_27 = arith.constant 0.000000e+00 : f32
      %32 = vector.broadcast %cst_27 : f32 to vector<8x1xf32>
      %c0_28 = arith.constant 0 : index
      %c0_29 = arith.constant 0 : index
      %33 = vector.load %arg6[%c0_28, %c0_29] : memref<8x1xf32, #tpu.memory_space<vmem>>, vector<8x1xf32>
      tpu.vector_store %arg6[%c0_28, %c0_29], %32 {strides = array<i32>} : memref<8x1xf32, #tpu.memory_space<vmem>>, vector<8x1xf32>,
    } else {
    }
    %c0 = arith.constant 0 : index
    %c0_2 = arith.constant 0 : index
    %c0_3 = arith.constant 0 : index
    %5 = vector.load %arg2[%c0, %c0_2, %c0_3] : memref<1x8x256xf32, #tpu.memory_space<vmem>>, vector<1x8x256xf32>
    %6 = vector.shape_cast %5 : vector<1x8x256xf32> to vector<8x256xf32>
    %c0_4 = arith.constant 0 : index
    %c0_5 = arith.constant 0 : index
    %7 = vector.load %arg3[%c0_4, %c0_5] : memref<8x8xf32, #tpu.memory_space<vmem>>, vector<8x8xf32>
    %cst = arith.constant dense<0.000000e+00> : vector<8x256xf32>
    %8 = tpu.matmul %7, %6, %cst {dimension_numbers = #tpu.dot_dimension_numbers<[1], [0], [0], [1], [0, 0, 1, 1], [], []>} : vector<8x8xf32>, vector<8x256xf32>, vector<8x256xf32> -> vector<8x256xf32>
    %cst_6 = arith.constant dense<0.000000e+00> : vector<8xf32>
    %9 = vector.multi_reduction <add>, %8, %cst_6 [1] : vector<8x256xf32> to vector<8xf32>
    %10 = vector.shape_cast %9 : vector<8xf32> to vector<8x1xf32>
    %cst_7 = arith.constant 2.560000e+02 : f32
    %11 = vector.broadcast %cst_7 : f32 to vector<8x1xf32>
    %12 = arith.divf %10, %11 : vector<8x1xf32>
    %13 = vector.broadcast %12 : vector<8x1xf32> to vector<8x256xf32>
    %14 = arith.subf %8, %13 : vector<8x256xf32>
    %c0_8 = arith.constant 0 : index
    %c0_9 = arith.constant 0 : index
    %15 = vector.load %arg4[%c0_8, %c0_9] : memref<8x1xf32, #tpu.memory_space<vmem>>, vector<8x1xf32>
    %16 = arith.addf %15, %10 : vector<8x1xf32>
    %c0_10 = arith.constant 0 : index
    %c0_11 = arith.constant 0 : index
    %17 = vector.load %arg4[%c0_10, %c0_11] : memref<8x1xf32, #tpu.memory_space<vmem>>, vector<8x1xf32>
    tpu.vector_store %arg4[%c0_10, %c0_11], %16 {strides = array<i32>} : memref<8x1xf32, #tpu.memory_space<vmem>>, vector<8x1xf32>,
    %c0_12 = arith.constant 0 : index
    %c0_13 = arith.constant 0 : index
    %18 = vector.load %arg5[%c0_12, %c0_13] : memref<8x1xf32, #tpu.memory_space<vmem>>, vector<8x1xf32>
    %19 = arith.mulf %14, %14 : vector<8x256xf32>
    %cst_14 = arith.constant dense<0.000000e+00> : vector<8xf32>
    %20 = vector.multi_reduction <add>, %19, %cst_14 [1] : vector<8x256xf32> to vector<8xf32>
    %21 = vector.shape_cast %20 : vector<8xf32> to vector<8x1xf32>
    %22 = arith.addf %18, %21 : vector<8x1xf32>
    %c0_15 = arith.constant 0 : index
    %c0_16 = arith.constant 0 : index
    %23 = vector.load %arg5[%c0_15, %c0_16] : memref<8x1xf32, #tpu.memory_space<vmem>>, vector<8x1xf32>
    tpu.vector_store %arg5[%c0_15, %c0_16], %22 {strides = array<i32>} : memref<8x1xf32, #tpu.memory_space<vmem>>, vector<8x1xf32>,
    %c0_17 = arith.constant 0 : index
    %c0_18 = arith.constant 0 : index
    %24 = vector.load %arg6[%c0_17, %c0_18] : memref<8x1xf32, #tpu.memory_space<vmem>>, vector<8x1xf32>
    %25 = arith.mulf %12, %12 : vector<8x1xf32>
    %26 = arith.addf %24, %25 : vector<8x1xf32>
    %c0_19 = arith.constant 0 : index
    %c0_20 = arith.constant 0 : index
    %27 = vector.load %arg6[%c0_19, %c0_20] : memref<8x1xf32, #tpu.memory_space<vmem>>, vector<8x1xf32>
    tpu.vector_store %arg6[%c0_19, %c0_20], %26 {strides = array<i32>} : memref<8x1xf32, #tpu.memory_space<vmem>>, vector<8x1xf32>,
    return
  }
  func.func @transform_0(%arg0: i32, %arg1: i32) -> (i32, i32, i32) {
    %c0_i32 = arith.constant 0 : i32
    %c0_i32_0 = arith.constant 0 : i32
    return %arg0, %c0_i32, %arg1 : i32, i32, i32
  }
  func.func @transform_1(%arg0: i32, %arg1: i32) -> (i32, i32) {
    %c0_i32 = arith.constant 0 : i32
    %c0_i32_0 = arith.constant 0 : i32
    %c0_i32_1 = arith.constant 0 : i32
    return %c0_i32, %c0_i32_0 : i32, i32
  }
  func.func @transform_2(%arg0: i32, %arg1: i32) -> (i32, i32) {
    %c0_i32 = arith.constant 0 : i32
    %c0_i32_0 = arith.constant 0 : i32
    %c0_i32_1 = arith.constant 0 : i32
    return %c0_i32, %c0_i32_0 : i32, i32
  }
  func.func @transform_3(%arg0: i32, %arg1: i32) -> (i32, i32) {
    %c0_i32 = arith.constant 0 : i32
    %c0_i32_0 = arith.constant 0 : i32
    %c0_i32_1 = arith.constant 0 : i32
    return %c0_i32, %c0_i32_0 : i32, i32
  }
  func.func @transform_4(%arg0: i32, %arg1: i32) -> (i32, i32) {
    %c0_i32 = arith.constant 0 : i32
    %c0_i32_0 = arith.constant 0 : i32
    %c0_i32_1 = arith.constant 0 : i32
    return %c0_i32, %c0_i32_0 : i32, i32
  }
}

</mosaic_0001>

<bundles_post_ra>
// kernel: tpu_custom_call.1
= control target key start
LH: loop header
LB: loop body
LE: loop exit
PB: predicated region body
PF: predicated region fallthrough
CT: control target
= control target key end

     0   :  { %10 = vsyncpa [#allocation3], 0  ;;  %s757_s0 = inlined_call_operand.hbm [shape: f32[2,8,256], index: 0, kind: input, shape index: {}]   ;;  %s758_s1 = inlined_call_operand.hbm [shape: f32[8,8], index: 1, kind: input, shape index: {}]   ;;  %s759_s2 = inlined_call_operand.vmem [shape: f32[8,1], index: 2, kind: output, shape index: {0}]   ;;  %s760_s3 = inlined_call_operand.vmem [shape: f32[8,1], index: 3, kind: output, shape index: {1}]   ;;  %s761_s4 = inlined_call_operand.vmem [shape: f32[8,1], index: 4, kind: output, shape index: {2}]  }
   0x1   :  { %12 = vsyncpa [#allocation3 + $0x1], 0 }
   0x2   :  { %13 = vsyncpa [#allocation5], 0  ;;  %s620_s15 = smov 0   ;;  %s622_s16 = smov 0  }
   0x3   :  { %s624_s17 = smov 0   ;;  %s626_s18 = smov 0  }
   0x4   :  { %s628_s19 = smov 0   ;;  %s630_s20 = smov 0  }
   0x5 LB: > { %s389_s21 = sadd.s32 4294967295, %s590_s20   ;;  %p53_p0 = scmp.ne.s32.totalorder %s574_s16, %s570_s15  ;;  %s590_s20 = sphi %s630_s20, %s19_s20   ;;  %s586_s19 = sphi %s628_s19, %s770_s19   ;;  %s582_s18 = sphi %s626_s18, %s769_s18   ;;  %s578_s17 = sphi %s624_s17, %s768_s17   ;;  %s574_s16 = sphi %s622_s16, %s767_s16   ;;  %s570_s15 = sphi %s620_s15, %s766_s15  }
   0x6   : > { %p650_p1 = scmp.eq.s32.totalorder %s389_s21, 0  ;;  %p390_p2 = scmp.ge.s32.totalorder %s590_s20, 1 }
   0x7   : > { %p148_p3 = scmp.lt.s32.totalorder %s590_s20, 3  ;;  %s160_s26 = sshll.u32 %s758_s1, 4  ;;  %s161_s26 = int_to_ptr.hbm [resolvable:$true] %s160_s26 }
   0x8   : > { %p658_p4 = por %p650_p1, %p53_p0  ;;  %s592_s28 = smov [#allocation4]  }
   0x9   : > { %p665_p5 = pnand %p390_p2, %p148_p3  ;;  %s162_s29 = sshll.u32 %s592_s28, 4  ;;  %s163_s29 = int_to_ptr.vmem [resolvable:$true] %s162_s29 }
   0xa   : > { %s31_s30 = sadd.s32 1, %s586_s19  ;;  %p47_p9 = scmp.ne.s32.totalorder %s578_s17, %s574_s16 }
   0xb   : > { %p412_p6 = pneg %p665_p5  ;;  %p33_p8 = scmp.ge.s32.totalorder %s31_s30, 2 }
   0xc   : > { %p48_p10 = scmp.eq.s32.totalorder %s590_s20, 0  ;;  %s40_s5 = sadd.s32 1, %s578_s17 }
   0xd   : > { %p413_p7 = pnand %p412_p6, %p650_p1  ;;  %s772_s30 = smov (%p33_p8, %s31_s30), 0 }
   0xe   : > { %p680_p11 = por %p48_p10, %p47_p9  ;;  %s35_s7 = ssub.s32 %s586_s19, %s772_s30 }
   0xf   : > { %415 = dma.hbm_to_vmem [thread:$0]  (!%p413_p7), %s161_s26, 128, %s163_s29, [#allocation5]  }
  0x10   : > { %s173_s8 = sand.u32 1, %s578_s17   ;;  %p38_p12 = scmp.eq.s32.totalorder %s35_s7, 0 }
  0x11   : > { %p421_p13 = scmp.lt.s32.totalorder %s590_s20, 2  ;;  %s393_s9 = sshll.u32 %s173_s8, 4 }
  0x12   : > { %s404_s10 = sshll.u32 %s586_s19, 4  ;;  %s177_s21 = scalar_lea.vmem [#allocation2], %s393_s9 }
  0x13   : > { %s690_s11 = scalar_select %p38_p12, %s578_s17, %s40_s5  }
  0x14   : > { %s184_s14 = scalar_lea.hbm %s757_s0, %s404_s10  ;;  %s188_s24 = sshll.u32 %s177_s21, 4  ;;  %s189_s24 = int_to_ptr.vmem [resolvable:$true] %s188_s24 }
  0x15   : > { %s186_s15 = sshll.u32 %s184_s14, 4  ;;  %p417_p0 = pnand %p421_p13, %p680_p11  ;;  %s187_s15 = int_to_ptr.hbm [resolvable:$true] %s186_s15 }
  0x16   : > { %s174_s25 = scalar_lea.sflag [#allocation3], %s173_s8  ;;  %197 = sbr.rel (%p665_p5) target bundleno = 410 (0x19a), region = 28 }
  0x17   : > { %419 = dma.hbm_to_vmem [thread:$0]  (!%p417_p0), %s187_s15, 256, %s189_s24, %s174_s25  }
  0x18   : > { %s199_s26 = sand.u32 (!%p665_p5), 1, %s574_s16  }
  0x19   : > { %s397_s28 = sshll.u32 (!%p665_p5), %s199_s26, 4  ;;  %s200_s29 = scalar_lea.sflag (!%p665_p5), [#allocation3], %s199_s26 }
  0x1a   : > { %s203_s5 = scalar_lea.vmem (!%p665_p5), [#allocation2], %s397_s28 }
  0x1b   : > { %561 = dma.done.wait (%p658_p4), %s200_s29, 256  }
  0x1c   : > { %563 = vsyncadd (%p658_p4), %s200_s29, 4294967040 }
  0x1d   : > { %565 = dma.done.wait (%p650_p1), [#allocation5], 128  }
  0x1e   : > { %567 = vsyncadd (%p650_p1), [#allocation5], 4294967168  ;;  %p230_p2 = scmp.eq.s32.totalorder %s582_s18, 0 }
  0x1f   : > { %vm236_vm0 = vcmask (%p230_p2), 7168   ;;  %v593_v0 = vmov (%p230_p2), 0.0  }
  0x20   : > { %235 = sbr.rel (!%p230_p2) target bundleno = 37 (0x25), region = 40  ;;  %237 = vst.msk [vmem:[%s759_s2] sm:$0xff] (%p230_p2), %vm236_vm0, %v593_v0 }
  0x21   : > { %238 = vst.msk [vmem:[%s760_s3] sm:$0xff] (%p230_p2), %vm236_vm0, %v593_v0 }
  0x22   : > { %239 = vst.msk [vmem:[%s761_s4] sm:$0xff] (%p230_p2), %vm236_vm0, %v593_v0 }
  0x25 PF: > { %v240_v1 = vld [vmem:[%s203_s5] sm:$0xff]  ;;  %v241_v2 = vld [vmem:[%s203_s5 + $0x8] sm:$0xff]  ;;  %vm243_vm1 = vcmask 64512   ;;  %v594_v7 = vmov 256.0   ;;  %vm302_vm3 = vcmask 7168  }
  0x26   : > { %v242_v3 = vld [vmem:[#allocation4] sm:$0xff]  ;;  %262 = vmatpush.msra.mxu0 %v240_v1  ;;  %282 = vmatpush.msra.mxu1 %v241_v2  ;;  %474 = vrcp.f32 %v594_v7 }
  0x27   : > { %400 = vmatmul.msk.f32.vlgmr.msra.gmra.mxu0 %vm243_vm1, %v242_v3  ;;  %401 = vmatmul.msk.f32.vlgmr.msra.gmra.mxu1 %vm243_vm1, %v242_v3  ;;  %v300_v14 = vld [vmem:[%s759_s2] sm:$0xff] }
  0x28   : > { %v304_v26 = vld [vmem:[%s760_s3] sm:$0xff] }
  0x29   : > { %v312_v18 = vld [vmem:[%s761_s4] sm:$0xff] }
  0x2c   : > { %v475_v8 = vpop.eup %474 }
  0x2d   : > { %v291_v9 = vmul.f32 256.0, %v475_v8  ;;  %vm295_vm2 = vweird.f32 %v475_v8 }
  0x2f   : > { %v292_v10 = vsub.f32 1.0, %v291_v9 }
  0x31   : > { %v293_v11 = vmul.f32 %v475_v8, %v292_v10 }
  0x33   : > { %v294_v12 = vadd.f32 %v475_v8, %v293_v11 }
  0x35   : > { %v296_v13 = vsel %vm295_vm2, %v475_v8, %v294_v12 }
  0xa4   : > { %v264_v4 = vpop.f32.mrf.mxu0  ;;  %v284_v5 = vpop.f32.mrf.mxu1 }
  0xa5   : > { %v287_v6 = vadd.f32 %v284_v5, %v264_v4 }
  0xa7   : > { %288 = vadd.xlane.f32.xlu0 %v287_v6 }
 0x11a   : > { %v289_v15 = vpop.xlane.xlu0 %288 }
 0x11b   : > { %v297_v16 = vmul.f32 %v296_v13, %v289_v15  ;;  %v301_v17 = vadd.f32 %v300_v14, %v289_v15 }
 0x11d   : > { %303 = vst.msk [vmem:[%s759_s2] sm:$0xff] %vm302_vm3, %v301_v17  ;;  %v313_v19 = vmul.f32 %v297_v16, %v297_v16  ;;  %v298_v20 = vsub.f32 %v264_v4, %v297_v16  ;;  %v299_v21 = vsub.f32 %v284_v5, %v297_v16 }
 0x11f   : > { %v314_v22 = vadd.f32 %v313_v19, %v312_v18  ;;  %v305_v23 = vmul.f32 %v298_v20, %v298_v20  ;;  %v306_v24 = vmul.f32 %v299_v21, %v299_v21 }
 0x121   : > { %315 = vst.msk [vmem:[%s761_s4] sm:$0xff] %vm302_vm3, %v314_v22  ;;  %v307_v25 = vadd.f32 %v306_v24, %v305_v23 }
 0x123   : > { %308 = vadd.xlane.f32.xlu0 %v307_v25 }
 0x196   : > { %v309_v27 = vpop.xlane.xlu0 %308 }
 0x197   : > { %v310_v28 = vadd.f32 %v309_v27, %v304_v26 }
 0x199   : > { %311 = vst.msk [vmem:[%s760_s3] sm:$0xff] %vm302_vm3, %v310_v28 }
 0x19a PF: > { %s19_s20 = sadd.s32 1, %s590_s20   ;;  %s766_s15 = smov %s574_s16 }
 0x19b   : > { %p16_p1 = scmp.ge.s32.totalorder %s19_s20, 4   ;;  %s767_s16 = smov %s578_s17 }
 0x19c   : > { %s768_s17 = smov %s690_s11  ;;  %s769_s18 = smov %s586_s19 }
 0x19d   : > { %s770_s19 = smov %s772_s30  ;;  %18 = sbr.rel (!%p16_p1) target bundleno = 5 (0x5), region = 88 }
 0x1a2   :  { %339 = vsyncpa [#allocation3], 1 }
 0x1a3   :  { %341 = vsyncpa [#allocation3 + $0x1], 1 }
 0x1a4   :  { %342 = vsyncpa [#allocation5], 1 }

</bundles_post_ra>
